<compile_context>
chip_gen: v7x
topology: tpu7x:2x2x1
jax: 0.10.0
libtpu: 0.0.40
codegen_flags: <defaults>
</compile_context>

<pallas_src>
import jax
import jax.numpy as jnp
from jax.experimental import pallas as pl
from jax.experimental.pallas import tpu as pltpu

EMB = 768                     # embedding_dimension
N_HIDDEN = 30                 # n
N_CLASSES = 3                 # num_classes
N_HEADS = 5
HID_ALL = N_HEADS * N_HIDDEN  # 150
OUT_ALL = N_HEADS * N_CLASSES # 15
BN_EPS = 1e-5

# Batch tile for large B: two double-buffered (TM, 768) f32 x-tiles ~ 6 MiB,
# comfortably inside v7x's 32 MiB scoped-VMEM default.
TM_MAX = 1024


def _fused_kernel(x_ref, w1_ref, b1_ref, w2_ref, b2_ref, out_ref):
    # x_ref:   (TM, EMB)          f32
    # w1_ref:  (EMB, HID_ALL)     bf16  (BN already folded in)
    # b1_ref:  (1, HID_ALL)       f32
    # w2_ref:  (HID_ALL, OUT_ALL) f32   (block-diagonal over heads)
    # b2_ref:  (1, OUT_ALL)       f32
    # out_ref: (TM, OUT_ALL)      f32
    x = x_ref[...]
    w1 = w1_ref[...].astype(jnp.float32)

    # dense1..5 (+ folded BN) in one MXU pass, then ReLU (dropout = identity in eval)
    h = jnp.dot(x, w1, preferred_element_type=jnp.float32) + b1_ref[...]
    h = jnp.maximum(h, 0.0)

    # output_dense1..5 in one MXU pass via the block-diagonal W2
    logits = jnp.dot(h, w2_ref[...], preferred_element_type=jnp.float32) + b2_ref[...]

    # Per-head softmax over groups of N_CLASSES lanes (unrolled, tiny VPU work),
    # then a single lane-dense store of the whole (TM, 15) slab.
    probs_all = []
    for hd in range(N_HEADS):
        lo = hd * N_CLASSES
        lg = logits[:, lo:lo + N_CLASSES]
        m = jnp.max(lg, axis=-1, keepdims=True)
        e = jnp.exp(lg - m)
        denom = jnp.sum(e, axis=-1, keepdims=True)
        probs_all.append(e * pl.reciprocal(denom, approx=True))
    out_ref[...] = jnp.concatenate(probs_all, axis=-1).astype(out_ref.dtype)


def prepare_params(raw):
    """One-time offline constant folding (NOT in the per-call hot path):
    fold eval-mode BN into W1/b1, concat heads, build block-diagonal W2,
    and store W1 in bfloat16."""
    scale = raw["gamma"] * jax.lax.rsqrt(raw["var"] + BN_EPS)        # (H, n)
    w1f = raw["w1"] * scale[:, None, :]                              # (H, D, n)
    b1f = (raw["b1"] - raw["mean"]) * scale + raw["beta"]            # (H, n)

    w1_all = jnp.transpose(w1f, (1, 0, 2)).reshape(EMB, HID_ALL)     # (D, H*n)
    b1_all = b1f.reshape(1, HID_ALL)

    w2_block = jnp.zeros((HID_ALL, OUT_ALL), jnp.float32)
    for h in range(N_HEADS):
        w2_block = w2_block.at[h * N_HIDDEN:(h + 1) * N_HIDDEN,
                               h * N_CLASSES:(h + 1) * N_CLASSES].set(raw["w2"][h])
    b2_all = raw["b2"].reshape(1, OUT_ALL)

    return {
        "w1": w1_all.astype(jnp.bfloat16),
        "b1": b1_all.astype(jnp.float32),
        "w2": w2_block.astype(jnp.float32),
        "b2": b2_all.astype(jnp.float32),
    }


def tc_model_forward(x, prep):
    """x: (B, EMB) float32. prep: output of prepare_params. Returns 5-tuple of (B, 3)."""
    B, D = x.shape
    assert D == EMB

    if B <= TM_MAX:
        tm, b_pad = B, B
    else:
        tm = TM_MAX
        b_pad = pl.cdiv(B, tm) * tm
    grid_b = b_pad // tm
    xp = x if b_pad == B else jnp.pad(x, ((0, b_pad - B), (0, 0)))

    cost = pl.CostEstimate(
        flops=2 * b_pad * (EMB * HID_ALL + HID_ALL * OUT_ALL),
        transcendentals=b_pad * (OUT_ALL + N_HEADS),         # exp + reciprocal
        bytes_accessed=int(xp.nbytes + prep["w1"].nbytes + prep["b1"].nbytes
                           + prep["w2"].nbytes + prep["b2"].nbytes
                           + b_pad * OUT_ALL * 4),
    )

    grid_spec = pl.GridSpec(
        grid=(grid_b,),
        in_specs=[
            pl.BlockSpec((tm, EMB), lambda i: (i, 0)),           # x streams by batch tile
            pl.BlockSpec((EMB, HID_ALL), lambda i: (0, 0)),      # weights stay resident
            pl.BlockSpec((1, HID_ALL), lambda i: (0, 0)),
            pl.BlockSpec((HID_ALL, OUT_ALL), lambda i: (0, 0)),
            pl.BlockSpec((1, OUT_ALL), lambda i: (0, 0)),
        ],
        out_specs=pl.BlockSpec((tm, OUT_ALL), lambda i: (i, 0)),
    )

    flat = pl.pallas_call(
        _fused_kernel,
        out_shape=jax.ShapeDtypeStruct((b_pad, OUT_ALL), jnp.float32),
        grid_spec=grid_spec,
        compiler_params=pltpu.CompilerParams(
            dimension_semantics=("parallel",),      # batch axis -> both TCs on v7x
            vmem_limit_bytes=32 * 1024 * 1024),
        cost_estimate=cost,
    )(xp, prep["w1"], prep["b1"], prep["w2"], prep["b2"])

    flat = flat[:B]
    return tuple(flat[:, h * N_CLASSES:(h + 1) * N_CLASSES] for h in range(N_HEADS))


def init_params(key):
    """Raw per-head parameters with PyTorch-matching shapes/init.
    Linear weights are stored transposed: (in, out)."""
    ks = jax.random.split(key, 4)
    bound1 = 1.0 / jnp.sqrt(EMB)
    bound2 = 1.0 / jnp.sqrt(N_HIDDEN)
    w1 = jax.random.uniform(ks[0], (N_HEADS, EMB, N_HIDDEN),
                            minval=-bound1, maxval=bound1, dtype=jnp.float32)
    b1 = jax.random.uniform(ks[1], (N_HEADS, N_HIDDEN),
                            minval=-bound1, maxval=bound1, dtype=jnp.float32)
    w2 = jax.random.uniform(ks[2], (N_HEADS, N_HIDDEN, N_CLASSES),
                            minval=-bound2, maxval=bound2, dtype=jnp.float32)
    b2 = jax.random.uniform(ks[3], (N_HEADS, N_CLASSES),
                            minval=-bound2, maxval=bound2, dtype=jnp.float32)
    return {
        "w1": w1, "b1": b1,
        "gamma": jnp.ones((N_HEADS, N_HIDDEN), jnp.float32),
        "beta": jnp.zeros((N_HEADS, N_HIDDEN), jnp.float32),
        "mean": jnp.zeros((N_HEADS, N_HIDDEN), jnp.float32),
        "var": jnp.ones((N_HEADS, N_HIDDEN), jnp.float32),
        "w2": w2, "b2": b2,
    }


def _reference_raw(x, p):
    """Pure-JAX f32 reference matching the PyTorch module (eval mode)."""
    hi = jax.lax.Precision.HIGHEST
    outs = []
    for h in range(N_HEADS):
        z = jnp.dot(x, p["w1"][h], precision=hi) + p["b1"][h]
        z = (z - p["mean"][h]) / jnp.sqrt(p["var"][h] + BN_EPS) * p["gamma"][h] + p["beta"][h]
        z = jnp.maximum(z, 0.0)
        logits = jnp.dot(z, p["w2"][h], precision=hi) + p["b2"][h]
        outs.append(jax.nn.softmax(logits, axis=-1))
    return tuple(outs)


def _reference_prepared(x, prep):
    """Reference using the exact prepared (BN-folded, bf16-stored) parameters."""
    hi = jax.lax.Precision.HIGHEST
    h = jnp.maximum(jnp.dot(x, prep["w1"].astype(jnp.float32), precision=hi) + prep["b1"], 0.0)
    logits = jnp.dot(h, prep["w2"], precision=hi) + prep["b2"]
    probs = jax.nn.softmax(logits.reshape(-1, N_HEADS, N_CLASSES), axis=-1)
    flat = probs.reshape(-1, OUT_ALL)
    return tuple(flat[:, k * N_CLASSES:(k + 1) * N_CLASSES] for k in range(N_HEADS))


if __name__ == "__main__":
    key = jax.random.PRNGKey(0)
    k_x, k_p = jax.random.split(key)
    B = 8
    x = jax.random.normal(k_x, (B, EMB), dtype=jnp.float32)
    raw = init_params(k_p)
    prep = prepare_params(raw)        # one-time parameter prep, outside the hot path

    outs = tc_model_forward(x, prep)
    outs = jax.block_until_ready(outs)

    ref_prep = _reference_prepared(x, prep)   # isolates kernel-only error
    ref_raw = _reference_raw(x, raw)          # PyTorch-semantics f32 reference
    for h, (o, rp, rr) in enumerate(zip(outs, ref_prep, ref_raw)):
        assert o.shape == (B, N_CLASSES)
        # 2e-3: approx reciprocal + MXU accumulation; 5e-3 additionally covers
        # bf16 storage of W1 relative to the raw f32 parameters.
        assert jnp.max(jnp.abs(o - rp)) < 2e-3, f"head {h}: mismatch vs prepared-param reference"
        assert jnp.max(jnp.abs(o - rr)) < 5e-3, f"head {h}: mismatch vs raw f32 reference"

    print("KERNEL_OK")
</pallas_src>

<mosaic_0001>
module attributes {stable_mosaic.version = 11 : i64} {
  func.func @_fused_kernel(%arg0: i32, %arg1: memref<8x768xf32, #tpu.memory_space<vmem>>, %arg2: memref<768x150xbf16, #tpu.memory_space<vmem>>, %arg3: memref<1x150xf32, #tpu.memory_space<vmem>>, %arg4: memref<150x15xf32, #tpu.memory_space<vmem>>, %arg5: memref<1x15xf32, #tpu.memory_space<vmem>>, %arg6: memref<8x15xf32, #tpu.memory_space<vmem>>) attributes {dimension_semantics = [#tpu.dimension_semantics<parallel>], iteration_bounds = array<i64: 1>, scalar_prefetch = 0 : i64, scratch_operands = 0 : i64, tpu.core_type = #tpu.core_type<tc>, window_params = [{transform_indices = @transform_0, window_bounds = array<i64: 8, 768>}, {pipeline_mode = #tpu.pipeline_mode<synchronous>, transform_indices = @transform_1, window_bounds = array<i64: 768, 150>}, {pipeline_mode = #tpu.pipeline_mode<synchronous>, transform_indices = @transform_2, window_bounds = array<i64: 1, 150>}, {pipeline_mode = #tpu.pipeline_mode<synchronous>, transform_indices = @transform_3, window_bounds = array<i64: 150, 15>}, {pipeline_mode = #tpu.pipeline_mode<synchronous>, transform_indices = @transform_4, window_bounds = array<i64: 1, 15>}, {transform_indices = @transform_5, window_bounds = array<i64: 8, 15>}]} {
    %c0 = arith.constant 0 : index
    %c0_0 = arith.constant 0 : index
    %0 = vector.load %arg1[%c0, %c0_0] : memref<8x768xf32, #tpu.memory_space<vmem>>, vector<8x768xf32>
    %c0_1 = arith.constant 0 : index
    %c0_2 = arith.constant 0 : index
    %1 = vector.load %arg2[%c0_1, %c0_2] : memref<768x150xbf16, #tpu.memory_space<vmem>>, vector<768x150xbf16>
    %2 = arith.extf %1 : vector<768x150xbf16> to vector<768x150xf32>
    %cst = arith.constant dense<0.000000e+00> : vector<8x150xf32>
    %3 = tpu.matmul %0, %2, %cst {dimension_numbers = #tpu.dot_dimension_numbers<[1], [0], [0], [1], [0, 0, 1, 1], [], []>} : vector<8x768xf32>, vector<768x150xf32>, vector<8x150xf32> -> vector<8x150xf32>
    %c0_3 = arith.constant 0 : index
    %c0_4 = arith.constant 0 : index
    %4 = vector.load %arg3[%c0_3, %c0_4] : memref<1x150xf32, #tpu.memory_space<vmem>>, vector<1x150xf32>
    %5 = vector.broadcast %4 : vector<1x150xf32> to vector<8x150xf32>
    %6 = arith.addf %3, %5 : vector<8x150xf32>
    %cst_5 = arith.constant 0.000000e+00 : f32
    %7 = vector.broadcast %cst_5 : f32 to vector<8x150xf32>
    %8 = arith.maximumf %6, %7 : vector<8x150xf32>
    %c0_6 = arith.constant 0 : index
    %c0_7 = arith.constant 0 : index
    %9 = vector.load %arg4[%c0_6, %c0_7] : memref<150x15xf32, #tpu.memory_space<vmem>>, vector<150x15xf32>
    %cst_8 = arith.constant dense<0.000000e+00> : vector<8x15xf32>
    %10 = tpu.matmul %8, %9, %cst_8 {dimension_numbers = #tpu.dot_dimension_numbers<[1], [0], [0], [1], [0, 0, 1, 1], [], []>} : vector<8x150xf32>, vector<150x15xf32>, vector<8x15xf32> -> vector<8x15xf32>
    %c0_9 = arith.constant 0 : index
    %c0_10 = arith.constant 0 : index
    %11 = vector.load %arg5[%c0_9, %c0_10] : memref<1x15xf32, #tpu.memory_space<vmem>>, vector<1x15xf32>
    %12 = vector.broadcast %11 : vector<1x15xf32> to vector<8x15xf32>
    %13 = arith.addf %10, %12 : vector<8x15xf32>
    %14 = vector.extract_strided_slice %13 {offsets = [0, 0], sizes = [8, 3], strides = [1, 1]} : vector<8x15xf32> to vector<8x3xf32>
    %cst_11 = arith.constant dense<0xFF800000> : vector<8xf32>
    %15 = vector.multi_reduction <maximumf>, %14, %cst_11 [1] : vector<8x3xf32> to vector<8xf32>
    %16 = vector.shape_cast %15 : vector<8xf32> to vector<8x1xf32>
    %17 = vector.broadcast %16 : vector<8x1xf32> to vector<8x3xf32>
    %18 = arith.subf %14, %17 : vector<8x3xf32>
    %19 = math.exp %18 : vector<8x3xf32>
    %cst_12 = arith.constant dense<0.000000e+00> : vector<8xf32>
    %20 = vector.multi_reduction <add>, %19, %cst_12 [1] : vector<8x3xf32> to vector<8xf32>
    %21 = vector.shape_cast %20 : vector<8xf32> to vector<8x1xf32>
    %22 = tpu.reciprocal %21 {approx = true} : vector<8x1xf32> -> vector<8x1xf32>
    %23 = vector.broadcast %22 : vector<8x1xf32> to vector<8x3xf32>
    %24 = arith.mulf %19, %23 : vector<8x3xf32>
    %25 = vector.extract_strided_slice %13 {offsets = [0, 3], sizes = [8, 3], strides = [1, 1]} : vector<8x15xf32> to vector<8x3xf32>
    %cst_13 = arith.constant dense<0xFF800000> : vector<8xf32>
    %26 = vector.multi_reduction <maximumf>, %25, %cst_13 [1] : vector<8x3xf32> to vector<8xf32>
    %27 = vector.shape_cast %26 : vector<8xf32> to vector<8x1xf32>
    %28 = vector.broadcast %27 : vector<8x1xf32> to vector<8x3xf32>
    %29 = arith.subf %25, %28 : vector<8x3xf32>
    %30 = math.exp %29 : vector<8x3xf32>
    %cst_14 = arith.constant dense<0.000000e+00> : vector<8xf32>
    %31 = vector.multi_reduction <add>, %30, %cst_14 [1] : vector<8x3xf32> to vector<8xf32>
    %32 = vector.shape_cast %31 : vector<8xf32> to vector<8x1xf32>
    %33 = tpu.reciprocal %32 {approx = true} : vector<8x1xf32> -> vector<8x1xf32>
    %34 = vector.broadcast %33 : vector<8x1xf32> to vector<8x3xf32>
    %35 = arith.mulf %30, %34 : vector<8x3xf32>
    %36 = vector.extract_strided_slice %13 {offsets = [0, 6], sizes = [8, 3], strides = [1, 1]} : vector<8x15xf32> to vector<8x3xf32>
    %cst_15 = arith.constant dense<0xFF800000> : vector<8xf32>
    %37 = vector.multi_reduction <maximumf>, %36, %cst_15 [1] : vector<8x3xf32> to vector<8xf32>
    %38 = vector.shape_cast %37 : vector<8xf32> to vector<8x1xf32>
    %39 = vector.broadcast %38 : vector<8x1xf32> to vector<8x3xf32>
    %40 = arith.subf %36, %39 : vector<8x3xf32>
    %41 = math.exp %40 : vector<8x3xf32>
    %cst_16 = arith.constant dense<0.000000e+00> : vector<8xf32>
    %42 = vector.multi_reduction <add>, %41, %cst_16 [1] : vector<8x3xf32> to vector<8xf32>
    %43 = vector.shape_cast %42 : vector<8xf32> to vector<8x1xf32>
    %44 = tpu.reciprocal %43 {approx = true} : vector<8x1xf32> -> vector<8x1xf32>
    %45 = vector.broadcast %44 : vector<8x1xf32> to vector<8x3xf32>
    %46 = arith.mulf %41, %45 : vector<8x3xf32>
    %47 = vector.extract_strided_slice %13 {offsets = [0, 9], sizes = [8, 3], strides = [1, 1]} : vector<8x15xf32> to vector<8x3xf32>
    %cst_17 = arith.constant dense<0xFF800000> : vector<8xf32>
    %48 = vector.multi_reduction <maximumf>, %47, %cst_17 [1] : vector<8x3xf32> to vector<8xf32>
    %49 = vector.shape_cast %48 : vector<8xf32> to vector<8x1xf32>
    %50 = vector.broadcast %49 : vector<8x1xf32> to vector<8x3xf32>
    %51 = arith.subf %47, %50 : vector<8x3xf32>
    %52 = math.exp %51 : vector<8x3xf32>
    %cst_18 = arith.constant dense<0.000000e+00> : vector<8xf32>
    %53 = vector.multi_reduction <add>, %52, %cst_18 [1] : vector<8x3xf32> to vector<8xf32>
    %54 = vector.shape_cast %53 : vector<8xf32> to vector<8x1xf32>
    %55 = tpu.reciprocal %54 {approx = true} : vector<8x1xf32> -> vector<8x1xf32>
    %56 = vector.broadcast %55 : vector<8x1xf32> to vector<8x3xf32>
    %57 = arith.mulf %52, %56 : vector<8x3xf32>
    %58 = vector.extract_strided_slice %13 {offsets = [0, 12], sizes = [8, 3], strides = [1, 1]} : vector<8x15xf32> to vector<8x3xf32>
    %cst_19 = arith.constant dense<0xFF800000> : vector<8xf32>
    %59 = vector.multi_reduction <maximumf>, %58, %cst_19 [1] : vector<8x3xf32> to vector<8xf32>
    %60 = vector.shape_cast %59 : vector<8xf32> to vector<8x1xf32>
    %61 = vector.broadcast %60 : vector<8x1xf32> to vector<8x3xf32>
    %62 = arith.subf %58, %61 : vector<8x3xf32>
    %63 = math.exp %62 : vector<8x3xf32>
    %cst_20 = arith.constant dense<0.000000e+00> : vector<8xf32>
    %64 = vector.multi_reduction <add>, %63, %cst_20 [1] : vector<8x3xf32> to vector<8xf32>
    %65 = vector.shape_cast %64 : vector<8xf32> to vector<8x1xf32>
    %66 = tpu.reciprocal %65 {approx = true} : vector<8x1xf32> -> vector<8x1xf32>
    %67 = vector.broadcast %66 : vector<8x1xf32> to vector<8x3xf32>
    %68 = arith.mulf %63, %67 : vector<8x3xf32>
    %69 = tpu.concatenate %24, %35, %46, %57, %68 in 1 : vector<8x3xf32>, vector<8x3xf32>, vector<8x3xf32>, vector<8x3xf32>, vector<8x3xf32> -> vector<8x15xf32>
    %c0_21 = arith.constant 0 : index
    %c0_22 = arith.constant 0 : index
    %70 = vector.load %arg6[%c0_21, %c0_22] : memref<8x15xf32, #tpu.memory_space<vmem>>, vector<8x15xf32>
    tpu.vector_store %arg6[%c0_21, %c0_22], %69 {strides = array<i32>} : memref<8x15xf32, #tpu.memory_space<vmem>>, vector<8x15xf32>,
    return
  }
  func.func @transform_0(%arg0: i32) -> (i32, i32) {
    %c0_i32 = arith.constant 0 : i32
    %c0_i32_0 = arith.constant 0 : i32
    return %arg0, %c0_i32 : i32, i32
  }
  func.func @transform_1(%arg0: i32) -> (i32, i32) {
    %c0_i32 = arith.constant 0 : i32
    %c0_i32_0 = arith.constant 0 : i32
    %c0_i32_1 = arith.constant 0 : i32
    return %c0_i32, %c0_i32_0 : i32, i32
  }
  func.func @transform_2(%arg0: i32) -> (i32, i32) {
    %c0_i32 = arith.constant 0 : i32
    %c0_i32_0 = arith.constant 0 : i32
    %c0_i32_1 = arith.constant 0 : i32
    return %c0_i32, %c0_i32_0 : i32, i32
  }
  func.func @transform_3(%arg0: i32) -> (i32, i32) {
    %c0_i32 = arith.constant 0 : i32
    %c0_i32_0 = arith.constant 0 : i32
    %c0_i32_1 = arith.constant 0 : i32
    return %c0_i32, %c0_i32_0 : i32, i32
  }
  func.func @transform_4(%arg0: i32) -> (i32, i32) {
    %c0_i32 = arith.constant 0 : i32
    %c0_i32_0 = arith.constant 0 : i32
    %c0_i32_1 = arith.constant 0 : i32
    return %c0_i32, %c0_i32_0 : i32, i32
  }
  func.func @transform_5(%arg0: i32) -> (i32, i32) {
    %c0_i32 = arith.constant 0 : i32
    %c0_i32_0 = arith.constant 0 : i32
    return %arg0, %c0_i32 : i32, i32
  }
}

</mosaic_0001>

<bundles_post_ra>
// kernel: tpu_custom_call.1
= control target key start
LH: loop header
LB: loop body
LE: loop exit
PB: predicated region body
PF: predicated region fallthrough
CT: control target
= control target key end

     0   :  { %s1698_s0 = inlined_call_operand.vmem [shape: f32[8,768], index: 0, kind: input, shape index: {}]   ;;  %s1699_s1 = inlined_call_operand.vmem [shape: bf16[768,150], index: 1, kind: input, shape index: {}]   ;;  %s1700_s2 = inlined_call_operand.vmem [shape: f32[1,150], index: 2, kind: input, shape index: {}]   ;;  %s1701_s3 = inlined_call_operand.vmem [shape: f32[150,15], index: 3, kind: input, shape index: {}]   ;;  %s1702_s4 = inlined_call_operand.vmem [shape: f32[1,15], index: 4, kind: input, shape index: {}]   ;;  %s1703_s5 = inlined_call_operand.hbm [shape: f32[8,15], index: 5, kind: output, shape index: {}]  }
   0x1   :  { %v1076_v0 = vld [vmem:[%s1699_s1 + $0x104] ss:$8 sps:$4 sm:$0xff]   ;;  %v1078_v1 = vld [vmem:[%s1699_s1 + $0x100] ss:$8 sps:$4 sm:$0xff]   ;;  %v1079_v2 = vld [vmem:[%s1699_s1 + $0x114] ss:$8 sps:$4 sm:$0xff]  }
   0x2   :  { %813 = vmatprep.subr.bf16.mxu0 %v1076_v0  ;;  %v1081_v3 = vld [vmem:[%s1699_s1 + $0x110] ss:$8 sps:$4 sm:$0xff]   ;;  %v1082_v4 = vld [vmem:[%s1699_s1 + $0x124] ss:$8 sps:$4 sm:$0xff]   ;;  %v1084_v5 = vld [vmem:[%s1699_s1 + $0x120] ss:$8 sps:$4 sm:$0xff]  }
   0x3   :  { %815 = vmatpush1.bf16.msra.mxu0 %v1078_v1  ;;  %v1085_v6 = vld [vmem:[%s1699_s1 + $0x134] ss:$8 sps:$4 sm:$0xff]   ;;  %v1087_v7 = vld [vmem:[%s1699_s1 + $0x130] ss:$8 sps:$4 sm:$0xff]   ;;  %v1088_v8 = vld [vmem:[%s1699_s1 + $0x144] ss:$8 sps:$4 sm:$0xff]  }
   0x4   :  { %817 = vmatprep.subr.bf16.mxu0 %v1079_v2  ;;  %v1090_v9 = vld [vmem:[%s1699_s1 + $0x140] ss:$8 sps:$4 sm:$0xff]   ;;  %v1091_v10 = vld [vmem:[%s1699_s1 + $0x154] ss:$8 sps:$4 sm:$0xff]   ;;  %v1093_v11 = vld [vmem:[%s1699_s1 + $0x150] ss:$8 sps:$4 sm:$0xff]  }
   0x5   :  { %v1094_v12 = vld [vmem:[%s1699_s1 + $0x164] ss:$8 sps:$4 sm:$0xff]   ;;  %v1126_v14 = vld [vmem:[%s1699_s1] ss:$8 sps:$4 sm:$0xff]   ;;  %v24_v15 = vld [vmem:[%s1698_s0 + $0x18] sm:$0xff] }
   0x6   :  { %v1123_v13 = vld [vmem:[%s1699_s1 + $0x4] ss:$8 sps:$4 sm:$0xff]   ;;  %v1096_v16 = vld [vmem:[%s1699_s1 + $0x160] ss:$8 sps:$4 sm:$0xff]   ;;  %v1097_v17 = vld [vmem:[%s1699_s1 + $0x174] ss:$8 sps:$4 sm:$0xff]   ;;  %462 = vmatprep.mubr.f32.mxu0 %v24_v15 }
   0x7   :  { %819 = vmatpush1.bf16.msra.mxu0 %v1081_v3  ;;  %749 = vmatprep.subr.bf16.mxu1 %v1123_v13  ;;  %v1130_v18 = vld [vmem:[%s1699_s1 + $0x14] ss:$8 sps:$4 sm:$0xff]   ;;  %v1132_v19 = vld [vmem:[%s1699_s1 + $0x10] ss:$8 sps:$4 sm:$0xff]   ;;  %v1100_v21 = vld [vmem:[%s1699_s1 + $0x184] ss:$8 sps:$4 sm:$0xff]  }
   0x8   :  { %821 = vmatprep.subr.bf16.mxu0 %v1082_v4  ;;  %751 = vmatpush1.bf16.msra.mxu1 %v1126_v14  ;;  %v1099_v20 = vld [vmem:[%s1699_s1 + $0x170] ss:$8 sps:$4 sm:$0xff]   ;;  %v1136_v22 = vld [vmem:[%s1699_s1 + $0x24] ss:$8 sps:$4 sm:$0xff]   ;;  %v1138_v23 = vld [vmem:[%s1699_s1 + $0x20] ss:$8 sps:$4 sm:$0xff]  }
   0x9   :  { %753 = vmatprep.subr.bf16.mxu1 %v1130_v18  ;;  %v1142_v24 = vld [vmem:[%s1699_s1 + $0x34] ss:$8 sps:$4 sm:$0xff]   ;;  %v1102_v25 = vld [vmem:[%s1699_s1 + $0x180] ss:$8 sps:$4 sm:$0xff]   ;;  %v1144_v27 = vld [vmem:[%s1699_s1 + $0x30] ss:$8 sps:$4 sm:$0xff]  }
   0xa   :  { %v1103_v26 = vld [vmem:[%s1699_s1 + $0x194] ss:$8 sps:$4 sm:$0xff]   ;;  %v1148_v28 = vld [vmem:[%s1699_s1 + $0x44] ss:$8 sps:$4 sm:$0xff]   ;;  %v1105_v29 = vld [vmem:[%s1699_s1 + $0x190] ss:$8 sps:$4 sm:$0xff]  }
   0xb   :  { %823 = vmatpush1.bf16.msra.mxu0 %v1084_v5  ;;  %v1106_v30 = vld [vmem:[%s1699_s1 + $0x1a4] ss:$8 sps:$4 sm:$0xff]   ;;  %v1150_v31 = vld [vmem:[%s1699_s1 + $0x40] ss:$8 sps:$4 sm:$0xff]   ;;  %v1154_v32 = vld [vmem:[%s1699_s1 + $0x54] ss:$8 sps:$4 sm:$0xff]  }
   0xc   :  { %825 = vmatprep.subr.bf16.mxu0 %v1085_v6  ;;  %755 = vmatpush1.bf16.msra.mxu1 %v1132_v19  ;;  %v1108_v33 = vld [vmem:[%s1699_s1 + $0x1a0] ss:$8 sps:$4 sm:$0xff]   ;;  %v1109_v34 = vld [vmem:[%s1699_s1 + $0x1b4] ss:$8 sps:$4 sm:$0xff]   ;;  %v1156_v35 = vld [vmem:[%s1699_s1 + $0x50] ss:$8 sps:$4 sm:$0xff]  }
   0xd   :  { %757 = vmatprep.subr.bf16.mxu1 %v1136_v22  ;;  %v1160_v36 = vld [vmem:[%s1699_s1 + $0x64] ss:$8 sps:$4 sm:$0xff]   ;;  %v1111_v37 = vld [vmem:[%s1699_s1 + $0x1b0] ss:$8 sps:$4 sm:$0xff]   ;;  %v1162_v39 = vld [vmem:[%s1699_s1 + $0x60] ss:$8 sps:$4 sm:$0xff]  }
   0xe   :  { %v1112_v38 = vld [vmem:[%s1699_s1 + $0x1c4] ss:$8 sps:$4 sm:$0xff]   ;;  %v1166_v40 = vld [vmem:[%s1699_s1 + $0x74] ss:$8 sps:$4 sm:$0xff]   ;;  %v1114_v41 = vld [vmem:[%s1699_s1 + $0x1c0] ss:$8 sps:$4 sm:$0xff]  }
   0xf   :  { %827 = vmatpush1.bf16.msra.mxu0 %v1087_v7  ;;  %v1115_v42 = vld [vmem:[%s1699_s1 + $0x1d4] ss:$8 sps:$4 sm:$0xff]   ;;  %v1168_v43 = vld [vmem:[%s1699_s1 + $0x70] ss:$8 sps:$4 sm:$0xff]   ;;  %v1172_v44 = vld [vmem:[%s1699_s1 + $0x84] ss:$8 sps:$4 sm:$0xff]  }
  0x10   :  { %829 = vmatprep.subr.bf16.mxu0 %v1088_v8  ;;  %759 = vmatpush1.bf16.msra.mxu1 %v1138_v23  ;;  %v1117_v45 = vld [vmem:[%s1699_s1 + $0x1d0] ss:$8 sps:$4 sm:$0xff]   ;;  %v1118_v46 = vld [vmem:[%s1699_s1 + $0x1e4] ss:$8 sps:$4 sm:$0xff]   ;;  %v1174_v47 = vld [vmem:[%s1699_s1 + $0x80] ss:$8 sps:$4 sm:$0xff]  }
  0x11   :  { %761 = vmatprep.subr.bf16.mxu1 %v1142_v24  ;;  %v1178_v48 = vld [vmem:[%s1699_s1 + $0x94] ss:$8 sps:$4 sm:$0xff]   ;;  %v1120_v49 = vld [vmem:[%s1699_s1 + $0x1e0] ss:$8 sps:$4 sm:$0xff]   ;;  %v1180_v51 = vld [vmem:[%s1699_s1 + $0x90] ss:$8 sps:$4 sm:$0xff]  }
  0x12   :  { %v1121_v50 = vld [vmem:[%s1699_s1 + $0x1f4] ss:$8 sps:$4 sm:$0xff]   ;;  %v1184_v52 = vld [vmem:[%s1699_s1 + $0xa4] ss:$8 sps:$4 sm:$0xff]   ;;  %v1125_v53 = vld [vmem:[%s1699_s1 + $0x1f0] ss:$8 sps:$4 sm:$0xff]  }
  0x13   :  { %831 = vmatpush1.bf16.msra.mxu0 %v1090_v9  ;;  %v1127_v54 = vld [vmem:[%s1699_s1 + $0x204] ss:$8 sps:$4 sm:$0xff]   ;;  %v1186_v55 = vld [vmem:[%s1699_s1 + $0xa0] ss:$8 sps:$4 sm:$0xff]   ;;  %v1190_v56 = vld [vmem:[%s1699_s1 + $0xb4] ss:$8 sps:$4 sm:$0xff]  }
  0x14   :  { %833 = vmatprep.subr.bf16.mxu0 %v1091_v10  ;;  %763 = vmatpush1.bf16.msra.mxu1 %v1144_v27  ;;  %v1129_v57 = vld [vmem:[%s1699_s1 + $0x200] ss:$8 sps:$4 sm:$0xff]   ;;  %v23_v58 = vld [vmem:[%s1698_s0 + $0x10] sm:$0xff]  ;;  %v1196_v62 = vld [vmem:[%s1699_s1 + $0xc4] ss:$8 sps:$4 sm:$0xff]  }
  0x15   :  { %765 = vmatprep.subr.bf16.mxu1 %v1148_v28  ;;  %v22_v59 = vld [vmem:[%s1698_s0 + $0x8] sm:$0xff]  ;;  %v1133_v60 = vld [vmem:[%s1699_s1 + $0x214] ss:$8 sps:$4 sm:$0xff]   ;;  %v1192_v61 = vld [vmem:[%s1699_s1 + $0xb0] ss:$8 sps:$4 sm:$0xff]  }
  0x16   :  { %391 = vmatprep.mubr.f32.mxu1 %v22_v59  ;;  %v26_v63 = vld [vmem:[%s1698_s0 + $0x28] sm:$0xff]  ;;  %v1135_v0 = vld [vmem:[%s1699_s1 + $0x210] ss:$8 sps:$4 sm:$0xff]   ;;  %v1202_v3 = vld [vmem:[%s1699_s1 + $0xd4] ss:$8 sps:$4 sm:$0xff]  }
  0x17   :  { %835 = vmatpush1.bf16.msra.mxu0 %v1093_v11  ;;  %v1139_v1 = vld [vmem:[%s1699_s1 + $0x224] ss:$8 sps:$4 sm:$0xff]   ;;  %v1198_v2 = vld [vmem:[%s1699_s1 + $0xc0] ss:$8 sps:$4 sm:$0xff]  }
  0x18   :  { %837 = vmatprep.subr.bf16.mxu0 %v1094_v12  ;;  %767 = vmatpush1.bf16.msra.mxu1 %v1150_v31  ;;  %v1141_v4 = vld [vmem:[%s1699_s1 + $0x220] ss:$8 sps:$4 sm:$0xff]  }
  0x19   :  { %769 = vmatprep.subr.bf16.mxu1 %v1154_v32 }
  0x1b   :  { %839 = vmatpush1.bf16.msra.mxu0 %v1096_v16 }
  0x1c   :  { %841 = vmatprep.subr.bf16.mxu0 %v1097_v17  ;;  %771 = vmatpush1.bf16.msra.mxu1 %v1156_v35 }
  0x1d   :  { %773 = vmatprep.subr.bf16.mxu1 %v1160_v36 }
  0x1f   :  { %843 = vmatpush1.bf16.msra.mxu0 %v1099_v20 }
  0x20   :  { %845 = vmatprep.subr.bf16.mxu0 %v1100_v21  ;;  %775 = vmatpush1.bf16.msra.mxu1 %v1162_v39 }
  0x21   :  { %777 = vmatprep.subr.bf16.mxu1 %v1166_v40 }
  0x23   :  { %847 = vmatpush1.bf16.msra.mxu0 %v1102_v25 }
  0x24   :  { %849 = vmatprep.subr.bf16.mxu0 %v1103_v26  ;;  %779 = vmatpush1.bf16.msra.mxu1 %v1168_v43 }
  0x25   :  { %781 = vmatprep.subr.bf16.mxu1 %v1172_v44 }
  0x27   :  { %851 = vmatpush1.bf16.msra.mxu0 %v1105_v29 }
  0x28   :  { %853 = vmatprep.subr.bf16.mxu0 %v1106_v30  ;;  %783 = vmatpush1.bf16.msra.mxu1 %v1174_v47 }
  0x29   :  { %785 = vmatprep.subr.bf16.mxu1 %v1178_v48 }
  0x2b   :  { %855 = vmatpush1.bf16.msra.mxu0 %v1108_v33 }
  0x2c   :  { %857 = vmatprep.subr.bf16.mxu0 %v1109_v34  ;;  %787 = vmatpush1.bf16.msra.mxu1 %v1180_v51 }
  0x2d   :  { %789 = vmatprep.subr.bf16.mxu1 %v1184_v52 }
  0x2f   :  { %859 = vmatpush1.bf16.msra.mxu0 %v1111_v37 }
  0x30   :  { %861 = vmatprep.subr.bf16.mxu0 %v1112_v38  ;;  %791 = vmatpush1.bf16.msra.mxu1 %v1186_v55 }
  0x31   :  { %793 = vmatprep.subr.bf16.mxu1 %v1190_v56 }
  0x33   :  { %863 = vmatpush1.bf16.msra.mxu0 %v1114_v41 }
  0x34   :  { %865 = vmatprep.subr.bf16.mxu0 %v1115_v42  ;;  %795 = vmatpush1.bf16.msra.mxu1 %v1192_v61 }
  0x35   :  { %797 = vmatprep.subr.bf16.mxu1 %v1196_v62 }
  0x37   :  { %867 = vmatpush1.bf16.msra.mxu0 %v1117_v45 }
  0x38   :  { %869 = vmatprep.subr.bf16.mxu0 %v1118_v46 }
  0x3b   :  { %871 = vmatpush1.bf16.msra.mxu0 %v1120_v49 }
  0x3c   :  { %873 = vmatprep.subr.bf16.mxu0 %v1121_v50 }
  0x3f   :  { %875 = vmatpush1.bf16.msra.mxu0 %v1125_v53 }
  0x40   :  { %877 = vmatprep.subr.bf16.mxu0 %v1127_v54 }
  0x42   :  { %463 = vmatmul.mubr.f32.vlgmr.msra.gmra.mrb[0].mxu0 %v23_v58 }
  0x43   :  { %879 = vmatpush1.bf16.msra.mxu0 %v1129_v57  ;;  %533 = vmatprep.mubr.f32.mxu0 %v26_v63 }
  0x44   :  { %881 = vmatprep.subr.bf16.mxu0 %v1133_v60 }
  0x47   :  { %883 = vmatpush1.bf16.msra.mxu0 %v1135_v0 }
  0x48   :  { %10 = vsyncpa [#allocation3], 0  ;;  %885 = vmatprep.subr.bf16.mxu0 %v1139_v1  ;;  %v1145_v5 = vld [vmem:[%s1699_s1 + $0x234] ss:$8 sps:$4 sm:$0xff]   ;;  %799 = vmatpush1.bf16.msra.mxu1 %v1198_v2  ;;  %v1204_v6 = vld [vmem:[%s1699_s1 + $0xd0] ss:$8 sps:$4 sm:$0xff]  }
  0x49   :  { %801 = vmatprep.subr.bf16.mxu1 %v1202_v3  ;;  %v1208_v7 = vld [vmem:[%s1699_s1 + $0xe4] ss:$8 sps:$4 sm:$0xff]   ;;  %v1147_v8 = vld [vmem:[%s1699_s1 + $0x230] ss:$8 sps:$4 sm:$0xff]   ;;  %v1210_v10 = vld [vmem:[%s1699_s1 + $0xe0] ss:$8 sps:$4 sm:$0xff]  }
  0x4a   :  { %v1151_v9 = vld [vmem:[%s1699_s1 + $0x244] ss:$8 sps:$4 sm:$0xff]   ;;  %v1214_v11 = vld [vmem:[%s1699_s1 + $0xf4] ss:$8 sps:$4 sm:$0xff]   ;;  %v1153_v12 = vld [vmem:[%s1699_s1 + $0x240] ss:$8 sps:$4 sm:$0xff]  }
  0x4b   :  { %887 = vmatpush1.bf16.msra.mxu0 %v1141_v4  ;;  %v1157_v13 = vld [vmem:[%s1699_s1 + $0x254] ss:$8 sps:$4 sm:$0xff]   ;;  %v1216_v14 = vld [vmem:[%s1699_s1 + $0xf0] ss:$8 sps:$4 sm:$0xff]   ;;  %v542_v15 = vld [vmem:[%s1701_s3] sm:$0xff]  ;;  %v1264_v21 = vmov 0.0|0.0  }
  0x4c   :  { %889 = vmatprep.subr.bf16.mxu0 %v1145_v5  ;;  %803 = vmatpush1.bf16.msra.mxu1 %v1204_v6  ;;  %v543_v16 = vld [vmem:[%s1701_s3 + $0x8] sm:$0xff]  ;;  %v1159_v17 = vld [vmem:[%s1699_s1 + $0x250] ss:$8 sps:$4 sm:$0xff]   ;;  %v21_v19 = vld [vmem:[%s1698_s0] sm:$0xff]  ;;  %vm572_vm0 = vcmask 1045504   ;;  %v1265_v3 = vmov 0.0   ;;  %v317_v6 = vlaneseq }
  0x4d   :  { %805 = vmatprep.subr.bf16.mxu1 %v1208_v7  ;;  %v1163_v18 = vld [vmem:[%s1699_s1 + $0x264] ss:$8 sps:$4 sm:$0xff]   ;;  %v941_v20 = vpack.c.bf16 %v543_v16, %v542_v15  ;;  %v544_v22 = vld [vmem:[%s1701_s3 + $0x10] sm:$0xff]  ;;  %v545_v23 = vld [vmem:[%s1701_s3 + $0x18] sm:$0xff]  ;;  %vm568_vm1 = vcmask 179200   ;;  %vm690_vm2 = vcmask 97352  }
  0x4e   :  { %v1165_v24 = vld [vmem:[%s1699_s1 + $0x260] ss:$8 sps:$4 sm:$0xff]   ;;  %v1169_v25 = vld [vmem:[%s1699_s1 + $0x274] ss:$8 sps:$4 sm:$0xff]   ;;  %v944_v26 = vpack.c.bf16 %v545_v23, %v544_v22  ;;  %v1171_v29 = vld [vmem:[%s1699_s1 + $0x270] ss:$8 sps:$4 sm:$0xff]  }
  0x4f   :  { %891 = vmatpush1.bf16.msra.mxu0 %v1147_v8  ;;  %v546_v27 = vld [vmem:[%s1701_s3 + $0x20] sm:$0xff]  ;;  %v547_v28 = vld [vmem:[%s1701_s3 + $0x28] sm:$0xff]  ;;  %v548_v32 = vld [vmem:[%s1701_s3 + $0x30] sm:$0xff]  ;;  %v318_v7 = vshrl.u32 %v317_v6, 7  ;;  %vm658_vm3 = vcmask 48152   ;;  %vm706_vm4 = vcmask 121952  }
  0x50   :  { %893 = vmatprep.subr.bf16.mxu0 %v1151_v9  ;;  %807 = vmatpush1.bf16.msra.mxu1 %v1210_v10  ;;  %v1175_v30 = vld [vmem:[%s1699_s1 + $0x284] ss:$8 sps:$4 sm:$0xff]   ;;  %v947_v31 = vpack.c.bf16 %v547_v28, %v546_v27  ;;  %v549_v33 = vld [vmem:[%s1701_s3 + $0x38] sm:$0xff]  ;;  %v1177_v34 = vld [vmem:[%s1699_s1 + $0x280] ss:$8 sps:$4 sm:$0xff]   ;;  %vm674_vm5 = vcmask 72752  }
  0x51   :  { %809 = vmatprep.subr.bf16.mxu1 %v1214_v11  ;;  %v1181_v35 = vld [vmem:[%s1699_s1 + $0x294] ss:$8 sps:$4 sm:$0xff]   ;;  %v950_v36 = vpack.c.bf16 %v549_v33, %v548_v32  ;;  %v550_v37 = vld [vmem:[%s1701_s3 + $0x40] sm:$0xff]  ;;  %v551_v38 = vld [vmem:[%s1701_s3 + $0x48] sm:$0xff]  ;;  %v319_v8 = vsub.s32 0, %v318_v7  ;;  %v323_v10 = vsub.s32 1, %v318_v7 }
  0x52   :  { %v1183_v39 = vld [vmem:[%s1699_s1 + $0x290] ss:$8 sps:$4 sm:$0xff]   ;;  %v1187_v40 = vld [vmem:[%s1699_s1 + $0x2a4] ss:$8 sps:$4 sm:$0xff]   ;;  %v953_v41 = vpack.c.bf16 %v551_v38, %v550_v37  ;;  %v1189_v44 = vld [vmem:[%s1699_s1 + $0x2a0] ss:$8 sps:$4 sm:$0xff]  }
  0x53   :  { %895 = vmatpush1.bf16.msra.mxu0 %v1153_v12  ;;  %v552_v42 = vld [vmem:[%s1701_s3 + $0x50] sm:$0xff]  ;;  %v553_v43 = vld [vmem:[%s1701_s3 + $0x58] sm:$0xff]  ;;  %v554_v47 = vld [vmem:[%s1701_s3 + $0x60] sm:$0xff]  ;;  %vm646_vm6 = vcmask 23552   ;;  %s1268_s11 = smov 122   ;;  %s1269_s12 = smov 116  }
  0x54   :  { %897 = vmatprep.subr.bf16.mxu0 %v1157_v13  ;;  %811 = vmatpush1.bf16.msra.mxu1 %v1216_v14  ;;  %v1193_v45 = vld [vmem:[%s1699_s1 + $0x2b4] ss:$8 sps:$4 sm:$0xff]   ;;  %v956_v46 = vpack.c.bf16 %v553_v43, %v552_v42  ;;  %v555_v48 = vld [vmem:[%s1701_s3 + $0x68] sm:$0xff]  ;;  %v1195_v49 = vld [vmem:[%s1699_s1 + $0x2b0] ss:$8 sps:$4 sm:$0xff]   ;;  %vm723_vm7 = vcmask 48128  }
  0x55   :  { %940 = vmatprep.subr.bf16.mxu1 %v1264_v21  ;;  %v1199_v50 = vld [vmem:[%s1699_s1 + $0x2c4] ss:$8 sps:$4 sm:$0xff]   ;;  %v959_v51 = vpack.c.bf16 %v555_v48, %v554_v47  ;;  %v1201_v52 = vld [vmem:[%s1699_s1 + $0x2c0] ss:$8 sps:$4 sm:$0xff]   ;;  %v1205_v53 = vld [vmem:[%s1699_s1 + $0x2d4] ss:$8 sps:$4 sm:$0xff]  }
  0x56   :  { %v1207_v54 = vld [vmem:[%s1699_s1 + $0x2d0] ss:$8 sps:$4 sm:$0xff]   ;;  %v1211_v55 = vld [vmem:[%s1699_s1 + $0x2e4] ss:$8 sps:$4 sm:$0xff]   ;;  %v1213_v56 = vld [vmem:[%s1699_s1 + $0x2e0] ss:$8 sps:$4 sm:$0xff]  }
  0x57   :  { %899 = vmatpush1.bf16.msra.mxu0 %v1159_v17  ;;  %392 = vmatmul.mubr.f32.vlgmr.msra.gmra.mrb[0].mxu1 %v21_v19  ;;  %v1217_v57 = vld [vmem:[%s1699_s1 + $0x2f4] ss:$8 sps:$4 sm:$0xff]   ;;  %v1219_v58 = vld [vmem:[%s1699_s1 + $0x2f0] ss:$8 sps:$4 sm:$0xff]   ;;  %v25_v59 = vld [vmem:[%s1698_s0 + $0x20] sm:$0xff]  ;;  %vm725_vm8 = vcmask 72704  }
  0x58   :  { %901 = vmatprep.subr.bf16.mxu0 %v1163_v18  ;;  %942 = vmatpush1.bf16.msra.mxu1 %v941_v20  ;;  %v556_v60 = vld [vmem:[%s1701_s3 + $0x70] sm:$0xff]  ;;  %v557_v61 = vld [vmem:[%s1701_s3 + $0x78] sm:$0xff]  ;;  %v558_v63 = vld [vmem:[%s1701_s3 + $0x80] sm:$0xff]  ;;  %s1270_s13 = smov [#allocation2]   ;;  %vm727_vm9 = vcmask 97280   ;;  %vm729_vm10 = vcmask 121856  }
  0x59   :  { %943 = vmatprep.subr.bf16.mxu1 %v1264_v21  ;;  %v962_v62 = vpack.c.bf16 %v557_v61, %v556_v60  ;;  %v559_v0 = vld [vmem:[%s1701_s3 + $0x88] sm:$0xff]  ;;  %v560_v2 = vld [vmem:[%s1701_s3 + $0x90] sm:$0x3f]  ;;  %v315_v9 = vld [vmem:[%s1700_s2] sm:$0x3]  ;;  %s1266_s2 = smov 125  }
  0x5a   :  { %v965_v1 = vpack.c.bf16 %v559_v0, %v558_v63  ;;  %v320_v11 = vrot.slane %v315_v9, %v319_v8  ;;  %v324_v12 = vrot.slane %v315_v9, %v323_v10  ;;  %s737_s14 = sshll.u32 %s1270_s13, 4  ;;  %s738_s14 = int_to_ptr.vmem [resolvable:$true] %s737_s14 }
  0x5b   :  { %903 = vmatpush1.bf16.msra.mxu0 %v1165_v24  ;;  %s1240_s15 = scalar_lea.vmem %s738_s14, 128  ;;  %p1245_p1 = scmp.lt.s32.totalorder %s738_s14, %s738_s14 }
  0x5c   :  { %905 = vmatprep.subr.bf16.mxu0 %v1169_v25  ;;  %945 = vmatpush1.bf16.msra.mxu1 %v944_v26  ;;  %p1241_p0 = scmp.ne.s32.totalorder %s738_s14, %s1240_s15  ;;  %p1246_p2 = scmp.lt.s32.totalorder %s1240_s15, %s1240_s15 }
  0x5d   :  { %946 = vmatprep.subr.bf16.mxu1 %v1264_v21 }
  0x5e   :  { %p1247_p3 = por %p1246_p2, %p1245_p1 }
  0x5f   :  { %907 = vmatpush1.bf16.msra.mxu0 %v1171_v29 }
  0x60   :  { %909 = vmatprep.subr.bf16.mxu0 %v1175_v30  ;;  %948 = vmatpush1.bf16.msra.mxu1 %v947_v31  ;;  %p1248_p4 = pnand %p1247_p3, %p1241_p0 }
  0x61   :  { %949 = vmatprep.subr.bf16.mxu1 %v1264_v21 }
  0x63   :  { %911 = vmatpush1.bf16.msra.mxu0 %v1177_v34 }
  0x64   :  { %913 = vmatprep.subr.bf16.mxu0 %v1181_v35  ;;  %951 = vmatpush1.bf16.msra.mxu1 %v950_v36 }
  0x65   :  { %952 = vmatprep.subr.bf16.mxu1 %v1264_v21 }
  0x67   :  { %915 = vmatpush1.bf16.msra.mxu0 %v1183_v39 }
  0x68   :  { %917 = vmatprep.subr.bf16.mxu0 %v1187_v40  ;;  %954 = vmatpush1.bf16.msra.mxu1 %v953_v41 }
  0x69   :  { %955 = vmatprep.subr.bf16.mxu1 %v1264_v21 }
  0x6b   :  { %919 = vmatpush1.bf16.msra.mxu0 %v1189_v44 }
  0x6c   :  { %921 = vmatprep.subr.bf16.mxu0 %v1193_v45  ;;  %957 = vmatpush1.bf16.msra.mxu1 %v956_v46 }
  0x6d   :  { %958 = vmatprep.subr.bf16.mxu1 %v1264_v21 }
  0x6f   :  { %923 = vmatpush1.bf16.msra.mxu0 %v1195_v49 }
  0x70   :  { %925 = vmatprep.subr.bf16.mxu0 %v1199_v50  ;;  %960 = vmatpush1.bf16.msra.mxu1 %v959_v51 }
  0x71   :  { %961 = vmatprep.subr.bf16.mxu1 %v1264_v21 }
  0x73   :  { %927 = vmatpush1.bf16.msra.mxu0 %v1201_v52 }
  0x74   :  { %929 = vmatprep.subr.bf16.mxu0 %v1205_v53  ;;  %963 = vmatpush1.bf16.msra.mxu1 %v962_v62 }
  0x75   :  { %964 = vmatprep.subr.bf16.mxu1 %v1264_v21  ;;  %v745_v21 = vld [vmem:[%s1702_s4] ss:$0 sm:$0xff]  ;;  %s1267_s4 = smov 119  }
  0x77   :  { %931 = vmatpush1.bf16.msra.mxu0 %v1207_v54 }
  0x78   :  { %933 = vmatprep.subr.bf16.mxu0 %v1211_v55  ;;  %966 = vmatpush1.bf16.msra.mxu1 %v965_v1 }
  0x79   :  { %612 = vmatprep.subr.mxu1 %v1265_v3 }
  0x7b   :  { %935 = vmatpush1.bf16.msra.mxu0 %v1213_v56 }
  0x7c   :  { %937 = vmatprep.subr.bf16.mxu0 %v1217_v57  ;;  %746 = vmatpush1.msk.msra.mxu1 %vm572_vm0, %v560_v2 }
  0x7f   :  { %939 = vmatpush1.bf16.msra.mxu0 %v1219_v58 }
  0x82   :  { %534 = vmatmul.mubr.f32.vlgmr.msra.gmra.mrb[0].mxu0 %v25_v59 }
 0x12a   :  { %v393_v4 = vpop.f32.mrb[0].mxu1 }
 0x12b   :  { %v395_v5 = vpop.f32.mrb[1].mxu1  ;;  %v394_v13 = vadd.f32 %v393_v4, %v320_v11 }
 0x12c   :  { %v396_v14 = vadd.f32 %v395_v5, %v324_v12 }
 0x155   :  { %v535_v15 = vpop.f32.mrb[0].mxu0 }
 0x156   :  { %v968_v16 = vadd.f32 %v535_v15, %v394_v13  ;;  %v537_v17 = vpop.f32.mrb[1].mxu0 }
 0x157   :  { %v970_v18 = vadd.f32 %v537_v17, %v396_v14 }
 0x158   :  { %v540_v20 = vmax.f32 %v968_v16, 0.0 }
 0x159   :  { %v541_v19 = vmax.f32 %v970_v18, 0.0 }
 0x15b   :  { %747 = vmatprep.mubr.msk.f32.mxu1 %vm568_vm1, %v541_v19 }
 0x15c   :  { %641 = vmatmul.mubr.f32.vlgmr.msra.gmra.mrb[2].mxu1 %v540_v20 }
 0x22f   :  { %v642_v22 = vpop.f32.mrb[2].mxu1 }
 0x230   :  { %v643_v23 = vadd.f32 %v745_v21, %v642_v22  ;;  %v644_v24 = vpop.f32.mrb[3].mxu1 }
 0x232   :  { %v691_v25 = vsel %vm690_vm2, %v643_v23, -inf  ;;  %v659_v26 = vsel %vm658_vm3, %v643_v23, -inf  ;;  %v707_v27 = vsel %vm706_vm4, %v643_v23, -inf  ;;  %v675_v28 = vsel %vm674_vm5, %v643_v23, -inf }
 0x233   :  { %692 = vmax.xlane.f32.xlu1 %v691_v25  ;;  %660 = vmax.xlane.f32.xlu0 %v659_v26  ;;  %v647_v29 = vsel %vm646_vm6, %v643_v23, -inf }
 0x237   :  { %708 = vmax.xlane.f32.xlu1 %v707_v27  ;;  %676 = vmax.xlane.f32.xlu0 %v675_v28 }
 0x23b   :  { %648 = vmax.xlane.f32.xlu0 %v647_v29 }
 0x2c0   :  { %v693_v30 = vpop.xlane.xlu1 %692  ;;  %v661_v31 = vpop.xlane.xlu0 %660 }
 0x2c1   :  { %v694_v32 = vsub.f32 %v643_v23, %v693_v30  ;;  %v662_v33 = vsub.f32 %v643_v23, %v661_v31 }
 0x2c3   :  { %v663_v34 = vmul.f32 1.442695, %v662_v33  ;;  %v695_v37 = vmul.f32 1.442695, %v694_v32 }
 0x2c4   :  { %v709_v35 = vpop.xlane.xlu1 %708  ;;  %v677_v36 = vpop.xlane.xlu0 %676 }
 0x2c5   :  { %v678_v38 = vsub.f32 %v643_v23, %v677_v36  ;;  %1220 = vpow2.f32 %v663_v34  ;;  %v710_v39 = vsub.f32 %v643_v23, %v709_v35 }
 0x2c6   :  { %1222 = vpow2.f32 %v695_v37 }
 0x2c7   :  { %v679_v40 = vmul.f32 1.442695, %v678_v38  ;;  %v711_v41 = vmul.f32 1.442695, %v710_v39 }
 0x2c8   :  { %v649_v46 = vpop.xlane.xlu0 %648 }
 0x2c9   :  { %1224 = vpow2.f32 %v679_v40  ;;  %v650_v47 = vsub.f32 %v643_v23, %v649_v46 }
 0x2ca   :  { %1226 = vpow2.f32 %v711_v41 }
 0x2cb   :  { %v651_v48 = vmul.f32 1.442695, %v650_v47 }
 0x2cd   :  { %1228 = vpow2.f32 %v651_v48 }
 0x2cf   :  { %v1221_v42 = vpop.eup %1220 }
 0x2d0   :  { %666 = vrot.lane.b32.xlu1 %v1221_v42, %s1266_s2  ;;  %v1223_v43 = vpop.eup %1222 }
 0x2d3   :  { %v1225_v44 = vpop.eup %1224 }
 0x2d4   :  { %698 = vrot.lane.b32.xlu1 %v1223_v43, %s1267_s4  ;;  %682 = vrot.lane.b32.xlu0 %v1225_v44, %s1268_s11  ;;  %v1227_v45 = vpop.eup %1226 }
 0x2d7   :  { %v1229_v49 = vpop.eup %1228 }
 0x2d8   :  { %714 = vrot.lane.b32.xlu1 %v1227_v45, %s1269_s12  ;;  %v653_v50 = vsel %vm646_vm6, %v1229_v49, 0.0 }
 0x2fc   :  { %654 = vadd.xlane.f32.xlu1 %v653_v50 }
 0x342   :  { %v667_v51 = vpop.permute.xlu1 %666 }
 0x343   :  { %v669_v52 = vsel %vm646_vm6, %v667_v51, 0.0 }
 0x344   :  { %670 = vadd.xlane.f32.xlu0 %v669_v52 }
 0x346   :  { %v699_v53 = vpop.permute.xlu1 %698  ;;  %v683_v54 = vpop.permute.xlu0 %682 }
 0x347   :  { %v685_v55 = vsel %vm646_vm6, %v683_v54, 0.0  ;;  %v701_v58 = vsel %vm646_vm6, %v699_v53, 0.0 }
 0x348   :  { %686 = vadd.xlane.f32.xlu0 %v685_v55 }
 0x34a   :  { %v715_v56 = vpop.permute.xlu1 %714 }
 0x34b   :  { %v717_v57 = vsel %vm646_vm6, %v715_v56, 0.0 }
 0x34c   :  { %718 = vadd.xlane.f32.xlu1 %v717_v57  ;;  %702 = vadd.xlane.f32.xlu0 %v701_v58 }
 0x389   :  { %v655_v60 = vpop.xlane.xlu1 %654 }
 0x3d1   :  { %v671_v59 = vpop.xlane.xlu0 %670 }
 0x3d2   :  { %1230 = vrcp.f32 %v671_v59 }
 0x3d5   :  { %v687_v61 = vpop.xlane.xlu0 %686 }
 0x3d6   :  { %1232 = vrcp.f32 %v687_v61 }
 0x3d7   :  { %1234 = vrcp.f32 %v655_v60 }
 0x3d9   :  { %v719_v62 = vpop.xlane.xlu1 %718  ;;  %v703_v63 = vpop.xlane.xlu0 %702 }
 0x3da   :  { %1236 = vrcp.f32 %v719_v62 }
 0x3db   :  { %1238 = vrcp.f32 %v703_v63 }
 0x3dc   :  { %v1231_v0 = vpop.eup %1230 }
 0x3dd   :  { %v673_v3 = vmul.f32 %v1231_v0, %v1221_v42 }
 0x3e0   :  { %v1233_v1 = vpop.eup %1232 }
 0x3e1   :  { %v1235_v2 = vpop.eup %1234  ;;  %v689_v4 = vmul.f32 %v1233_v1, %v1225_v44 }
 0x3e2   :  { %v657_v6 = vmul.f32 %v1235_v2, %v1229_v49 }
 0x3e4   :  { %v1237_v5 = vpop.eup %1236  ;;  %v722_v10 = vsel %vm646_vm6, %v657_v6, %v673_v3 }
 0x3e5   :  { %v1239_v7 = vpop.eup %1238  ;;  %v721_v8 = vmul.f32 %v1237_v5, %v1227_v45  ;;  %v724_v11 = vsel %vm723_vm7, %v722_v10, %v689_v4 }
 0x3e6   :  { %v705_v9 = vmul.f32 %v1239_v7, %v1223_v43 }
 0x3e8   :  { %v726_v12 = vsel %vm725_vm8, %v724_v11, %v705_v9 }
 0x3e9   :  { %v728_v13 = vsel %vm727_vm9, %v726_v12, %v721_v8 }
 0x3ea   :  { %730 = vst.msk [vmem:[#allocation2] sm:$0xff] %vm729_vm10, %v728_v13 }
 0x3eb   :  { %1251 = shalt.err (!%p1248_p4)
}
 0x3ec   :  { %s1252_s18 = scalar_lea.hbm %s1703_s5, 128 }
 0x3ed   :  { %p1253_p5 = scmp.ne.s32.totalorder %s1703_s5, %s1252_s18  ;;  %p1256_p6 = scmp.lt.u32.totalorder %s1252_s18, %s1703_s5 }
 0x3ef   :  { %p1258_p7 = pnand %p1256_p6, %p1253_p5 }
 0x3f1   :  { %1261 = shalt.err (!%p1258_p7)
}
 0x3f2   :  { %740 = dma.vmem_to_hbm [thread:$0]  %s738_s14, 128, %s1703_s5, [#allocation3]  }
 0x3f3   :  { %1262 = dma.done.wait [#allocation3], 128  }
 0x3f4   :  { %1263 = vsyncadd [#allocation3], 4294967168 }
 0x3f5   :  { %744 = vsyncpa [#allocation3], 1 }

</bundles_post_ra>
